<compile_context>
chip_gen: v6e
topology: v6e:2x2x1
jax: 0.10.0
libtpu: 0.0.40
codegen_flags: <defaults>
</compile_context>

<pallas_src>
import functools

import jax
import jax.numpy as jnp
from jax.experimental import pallas as pl
from jax.experimental.pallas import tpu as pltpu

TM = 512    # row tile for conv-as-matmul kernels
TR = 1024   # row tile (x128 lanes) for flat elementwise reductions
TRL = 1024  # row tile for LPIPS layer reduction


def _round_up(x, m):
    return ((x + m - 1) // m) * m


# --------------------------------------------------------------------------
# Pallas kernels
# --------------------------------------------------------------------------
def _mm_bias_act_kernel(a_ref, w_ref, b_ref, o_ref, *, act):
    """One row-tile of  act(A @ W + b).  A/W are bf16, accumulate in f32."""
    acc = jnp.dot(a_ref[...], w_ref[...], preferred_element_type=jnp.float32)
    acc = acc + b_ref[...]
    if act == "lrelu":
        acc = jnp.where(acc >= 0.0, acc, 0.2 * acc)
    elif act == "relu":
        acc = jnp.maximum(acc, 0.0)
    elif act == "sigmoid":
        acc = jax.nn.sigmoid(acc)
    o_ref[...] = acc


def _mm_bce_kernel(a_ref, w_ref, b_ref, o_ref, acc_ref, *,
                   targets, n_valid, inv_count, tm):
    """Fused final conv (OC=1) + sigmoid + BCE(constant target) partial sums.

    Grid axis 0 is a sequential reduction over row tiles; acc_ref is SMEM
    scratch that persists across grid steps; o_ref is the (1, n_targets) SMEM
    result (written every step, final step's value is the total).
    """
    i = pl.program_id(0)

    @pl.when(i == 0)
    def _():
        for t_idx in range(len(targets)):
            acc_ref[t_idx] = jnp.float32(0.0)

    logits = jnp.dot(a_ref[...], w_ref[...], preferred_element_type=jnp.float32)
    logits = logits + b_ref[...]
    p = jnp.clip(jax.nn.sigmoid(logits), 1e-7, 1.0 - 1e-7)        # (tm, 1)

    # Mask rows past the true row count (partial last tile reads garbage).
    row = i * tm + jax.lax.broadcasted_iota(jnp.int32, p.shape, 0)
    valid = row < n_valid

    logp = jnp.log(p)
    log1mp = jnp.log(1.0 - p)
    for t_idx, t in enumerate(targets):
        loss = -(t * logp + (1.0 - t) * log1mp)
        acc_ref[t_idx] += jnp.sum(jnp.where(valid, loss, 0.0))
        o_ref[0, t_idx] = acc_ref[t_idx] * inv_count


def _mse_kernel(a_ref, b_ref, o_ref, acc_ref, *, n_valid, inv_count, tr):
    """Tiled MSE reduction over (rows, 128) tiles with in-kernel tail masking."""
    i = pl.program_id(0)

    @pl.when(i == 0)
    def _():
        acc_ref[0] = jnp.float32(0.0)

    d = a_ref[...] - b_ref[...]
    idx = (i * tr + jax.lax.broadcasted_iota(jnp.int32, d.shape, 0)) * 128 \
        + jax.lax.broadcasted_iota(jnp.int32, d.shape, 1)
    valid = idx < n_valid
    acc_ref[0] += jnp.sum(jnp.where(valid, d * d, 0.0))
    o_ref[0, 0] = acc_ref[0] * inv_count


def _lpips_layer_kernel(fr_ref, ff_ref, w_ref, o_ref, acc_ref, *,
                        n_rows, inv_count, eps, trl):
    """Tiled LPIPS layer: per-row channel-normalize, weighted sq-diff, mean."""
    i = pl.program_id(0)

    @pl.when(i == 0)
    def _():
        acc_ref[0] = jnp.float32(0.0)

    fr = fr_ref[...]
    ff = ff_ref[...]
    nr = fr * jax.lax.rsqrt(jnp.sum(fr * fr, axis=-1, keepdims=True) + eps)
    nf = ff * jax.lax.rsqrt(jnp.sum(ff * ff, axis=-1, keepdims=True) + eps)
    diff = nr - nf
    d = diff * diff * w_ref[...]

    row = i * trl + jax.lax.broadcasted_iota(jnp.int32, d.shape, 0)
    valid = row < n_rows
    acc_ref[0] += jnp.sum(jnp.where(valid, d, 0.0))
    o_ref[0, 0] = acc_ref[0] * inv_count


# --------------------------------------------------------------------------
# Pallas wrappers
# --------------------------------------------------------------------------
def matmul_bias_act(a, w, b, act="none"):
    """a: (M, K), w: (K, OC), b: (OC,) -> (M, OC) f32 = act(a @ w + b)."""
    M, K = a.shape
    OC = w.shape[1]
    tm = min(TM, _round_up(M, 8))
    a_bf = a.astype(jnp.bfloat16)
    w_bf = w.astype(jnp.bfloat16)
    b2 = b.reshape(1, OC).astype(jnp.float32)
    out = pl.pallas_call(
        functools.partial(_mm_bias_act_kernel, act=act),
        out_shape=jax.ShapeDtypeStruct((M, OC), jnp.float32),
        grid=(pl.cdiv(M, tm),),
        in_specs=[
            pl.BlockSpec((tm, K), lambda i: (i, 0)),
            pl.BlockSpec((K, OC), lambda i: (0, 0)),   # resident across steps
            pl.BlockSpec((1, OC), lambda i: (0, 0)),
        ],
        out_specs=pl.BlockSpec((tm, OC), lambda i: (i, 0)),
        compiler_params=pltpu.CompilerParams(dimension_semantics=("parallel",)),
    )(a_bf, w_bf, b2)
    return out


def _flatten_rows(x):
    """Flatten to 1D, pad to a multiple of 1024, reshape to (rows, 128)."""
    xf = x.reshape(-1)
    n = xf.shape[0]
    npad = _round_up(n, 1024)
    if npad != n:
        xf = jnp.pad(xf, (0, npad - n))
    return xf.reshape(-1, 128), n


def mse_loss(a, b):
    a2, n = _flatten_rows(a)
    b2, _ = _flatten_rows(b)
    rows = a2.shape[0]
    tr = min(TR, rows)
    out = pl.pallas_call(
        functools.partial(_mse_kernel, n_valid=n, inv_count=1.0 / n, tr=tr),
        out_shape=jax.ShapeDtypeStruct((1, 1), jnp.float32),
        grid=(pl.cdiv(rows, tr),),
        in_specs=[pl.BlockSpec((tr, 128), lambda i: (i, 0))] * 2,
        out_specs=pl.BlockSpec(memory_space=pltpu.MemorySpace.SMEM),
        scratch_shapes=[pltpu.SMEM((1,), jnp.float32)],
        compiler_params=pltpu.CompilerParams(dimension_semantics=("arbitrary",)),
    )(a2, b2)
    return out[0, 0]


def lpips_layer(feat_real, feat_fake, w_lin):
    """feat_*: (N, OH, OW, C); w_lin: (1, C) nonneg.  Mean over (N*OH*OW)."""
    C = feat_real.shape[-1]
    fr = feat_real.reshape(-1, C)
    ff = feat_fake.reshape(-1, C)
    R = fr.shape[0]
    trl = min(TRL, _round_up(R, 8))
    out = pl.pallas_call(
        functools.partial(_lpips_layer_kernel, n_rows=R, inv_count=1.0 / R,
                          eps=1e-10, trl=trl),
        out_shape=jax.ShapeDtypeStruct((1, 1), jnp.float32),
        grid=(pl.cdiv(R, trl),),
        in_specs=[
            pl.BlockSpec((trl, C), lambda i: (i, 0)),
            pl.BlockSpec((trl, C), lambda i: (i, 0)),
            pl.BlockSpec((1, C), lambda i: (0, 0)),
        ],
        out_specs=pl.BlockSpec(memory_space=pltpu.MemorySpace.SMEM),
        scratch_shapes=[pltpu.SMEM((1,), jnp.float32)],
        compiler_params=pltpu.CompilerParams(dimension_semantics=("arbitrary",)),
    )(fr, ff, w_lin)
    return out[0, 0]


# --------------------------------------------------------------------------
# Conv-as-matmul glue (im2col in plain JAX, matmul in Pallas)
# --------------------------------------------------------------------------
# TODO(synk): im2col still materializes a kh*kw-expanded patch matrix in HBM
#             (bf16 halves it); a fully in-kernel tap gather would remove it.
def _im2col(x, kh, kw, stride, pad):
    """x: (N, H, W, C) NHWC -> (N*OH*OW, kh*kw*C) with (kh, kw, c) column order."""
    xp = jnp.pad(x, ((0, 0), (pad, pad), (pad, pad), (0, 0)))
    N, Hp, Wp, C = xp.shape
    oh = (Hp - kh) // stride + 1
    ow = (Wp - kw) // stride + 1
    cols = []
    for i in range(kh):
        for j in range(kw):
            cols.append(xp[:, i:i + stride * oh:stride, j:j + stride * ow:stride, :])
    p = jnp.concatenate(cols, axis=-1)
    return p.reshape(N * oh * ow, kh * kw * C), (N, oh, ow)


def conv2d(x_nhwc, w_mat, b, k, s, p, act):
    patches, (N, oh, ow) = _im2col(x_nhwc.astype(jnp.bfloat16), k, k, s, p)
    out = matmul_bias_act(patches, w_mat, b, act)
    return out.reshape(N, oh, ow, -1)


# --------------------------------------------------------------------------
# Synthetic discriminator + LPIPS-style perceptual net
# --------------------------------------------------------------------------
def discriminator_features(params, x_nhwc):
    h = conv2d(x_nhwc, params["d1_w"], params["d1_b"], 4, 2, 1, "lrelu")
    h = conv2d(h, params["d2_w"], params["d2_b"], 4, 2, 1, "lrelu")
    return h


def discriminator_bce(params, feats_nhwc, targets):
    """Final 3x3/OC=1 conv + sigmoid + BCE(target) fused. Returns one scalar per target."""
    patches, _ = _im2col(feats_nhwc.astype(jnp.bfloat16), 3, 3, 1, 1)
    w = params["d3_w"].astype(jnp.bfloat16)
    b = params["d3_b"].reshape(1, -1).astype(jnp.float32)
    M, K = patches.shape
    OC = w.shape[1]
    nt = len(targets)
    tm = min(TM, _round_up(M, 8))
    out = pl.pallas_call(
        functools.partial(_mm_bce_kernel,
                          targets=tuple(float(t) for t in targets),
                          n_valid=M, inv_count=1.0 / M, tm=tm),
        out_shape=jax.ShapeDtypeStruct((1, nt), jnp.float32),
        grid=(pl.cdiv(M, tm),),
        in_specs=[
            pl.BlockSpec((tm, K), lambda i: (i, 0)),
            pl.BlockSpec((K, OC), lambda i: (0, 0)),
            pl.BlockSpec((1, OC), lambda i: (0, 0)),
        ],
        out_specs=pl.BlockSpec(memory_space=pltpu.MemorySpace.SMEM),
        scratch_shapes=[pltpu.SMEM((nt,), jnp.float32)],
        compiler_params=pltpu.CompilerParams(dimension_semantics=("arbitrary",)),
    )(patches, w, b)
    return tuple(out[0, t] for t in range(nt))


def lpips_features(params, x_nhwc):
    f1 = conv2d(x_nhwc, params["p1_w"], params["p1_b"], 3, 1, 1, "relu")
    f2 = conv2d(f1, params["p2_w"], params["p2_b"], 3, 2, 1, "relu")
    return [f1, f2]


def lpips_loss(params, real_nhwc, fake_nhwc):
    fr = lpips_features(params, real_nhwc)
    ff = lpips_features(params, fake_nhwc)
    total = jnp.float32(0.0)
    for layer_idx, (r, f) in enumerate(zip(fr, ff)):
        total = total + lpips_layer(r, f, params[f"lp{layer_idx + 1}_w"])
    return total


# --------------------------------------------------------------------------
# FirstStageLoss forward
# --------------------------------------------------------------------------
def first_stage_loss(params, images, videos, reconstructions, vq_loss, step,
                     mse_weight=1.0, vq_weight=0.1, adv_weight=0.1,
                     perc_weight=0.1, start_disc=0):
    # images: (B, C, H, W); videos: (B, T, C, H, W) or None;
    # reconstructions: (B, T+1, C, H, W)  -- NCHW like PyTorch.
    # NOTE: `step`/`start_disc` must be static Python ints (the reference uses
    #       a Python-level `if step >= self.start_disc`).
    if videos is not None:
        vids = jnp.concatenate([images[:, None], videos], axis=1)
        vids = vids.reshape((-1,) + videos.shape[2:])
    else:
        vids = images
    recon = reconstructions.reshape((-1,) + reconstructions.shape[2:])

    vids_nhwc = jnp.transpose(vids, (0, 2, 3, 1)).astype(jnp.float32)
    recon_nhwc = jnp.transpose(recon, (0, 2, 3, 1)).astype(jnp.float32)

    mse = mse_loss(vids_nhwc, recon_nhwc)

    if step >= start_disc:
        feat_real = discriminator_features(params, vids_nhwc)
        (d_real_loss,) = discriminator_bce(params, feat_real, targets=(0.1,))
        # d_fake (detached recon) and d_recon share identical forward values:
        # run the discriminator once on recon, compute both BCE terms fused.
        feat_fake = discriminator_features(params, recon_nhwc)
        d_fake_loss, g_loss = discriminator_bce(params, feat_fake, targets=(0.9, 0.1))
        d_loss = 0.5 * (d_real_loss + d_fake_loss)
    else:
        g_loss = jnp.float32(0.0)
        d_loss = None

    lp = lpips_loss(params, vids_nhwc, recon_nhwc)

    loss = (mse_weight * mse + adv_weight * g_loss
            + perc_weight * lp + vq_weight * vq_loss)
    return loss, d_loss


# --------------------------------------------------------------------------
# Deterministic parameter init
# --------------------------------------------------------------------------
def init_params(key):
    def conv_init(k, ksz, ic, oc, scale=0.1):
        kw_, kb_ = jax.random.split(k)
        w = jax.random.normal(kw_, (ksz * ksz * ic, oc), jnp.float32) * scale
        b = jax.random.normal(kb_, (oc,), jnp.float32) * 0.01
        return w, b

    ks = jax.random.split(key, 8)
    params = {}
    # Discriminator: 3 -> 16 -> 32 -> 1 (sigmoid folded into BCE kernel)
    params["d1_w"], params["d1_b"] = conv_init(ks[0], 4, 3, 16)
    params["d2_w"], params["d2_b"] = conv_init(ks[1], 4, 16, 32)
    params["d3_w"], params["d3_b"] = conv_init(ks[2], 3, 32, 1)
    # LPIPS-style perceptual net: 3 -> 8 -> 16
    params["p1_w"], params["p1_b"] = conv_init(ks[3], 3, 3, 8)
    params["p2_w"], params["p2_b"] = conv_init(ks[4], 3, 8, 16)
    # LPIPS per-channel nonnegative linear weights (1x1 conv equivalent)
    params["lp1_w"] = jnp.abs(jax.random.normal(ks[5], (1, 8), jnp.float32)) * 0.5
    params["lp2_w"] = jnp.abs(jax.random.normal(ks[6], (1, 16), jnp.float32)) * 0.5
    return params


# --------------------------------------------------------------------------
if __name__ == "__main__":
    key = jax.random.PRNGKey(0)
    kimg, kvid, krec, kpar = jax.random.split(key, 4)

    B, T, C, H, W = 2, 3, 3, 16, 16
    images = jax.random.normal(kimg, (B, C, H, W), jnp.float32)
    videos = jax.random.normal(kvid, (B, T, C, H, W), jnp.float32)
    reconstructions = jax.random.normal(krec, (B, T + 1, C, H, W), jnp.float32)
    vq_loss = jnp.float32(0.25)

    params = init_params(kpar)

    loss, d_loss = first_stage_loss(params, images, videos, reconstructions,
                                    vq_loss, step=1)
    jax.block_until_ready((loss, d_loss))
    print("KERNEL_OK")
</pallas_src>

<mosaic_0001>
module attributes {stable_mosaic.version = 11 : i64} {
  func.func @_mse_kernel(%arg0: i32, %arg1: memref<48x128xf32, #tpu.memory_space<vmem>>, %arg2: memref<48x128xf32, #tpu.memory_space<vmem>>, %arg3: memref<1x1xf32, #tpu.memory_space<smem>>, %arg4: memref<1xf32, #tpu.memory_space<smem>>) attributes {dimension_semantics = [#tpu.dimension_semantics<arbitrary>], iteration_bounds = array<i64: 1>, scalar_prefetch = 0 : i64, scratch_operands = 1 : i64, tpu.core_type = #tpu.core_type<tc>, window_params = [{transform_indices = @transform_0, window_bounds = array<i64: 48, 128>}, {transform_indices = @transform_1, window_bounds = array<i64: 48, 128>}, {transform_indices = @transform_2, window_bounds = array<i64: 1, 1>}]} {
    %c0_i32 = arith.constant 0 : i32
    %0 = arith.cmpi eq, %arg0, %c0_i32 : i32
    %1 = arith.extui %0 : i1 to i32
    %c0_i32_0 = arith.constant 0 : i32
    %2 = arith.cmpi ne, %1, %c0_i32_0 : i32
    scf.if %2 {
      %cst_11 = arith.constant 0.000000e+00 : f32
      %c0_12 = arith.constant 0 : index
      %29 = memref.load %arg4[%c0_12] : memref<1xf32, #tpu.memory_space<smem>>
      memref.store %cst_11, %arg4[%c0_12] : memref<1xf32, #tpu.memory_space<smem>>
    } else {
    }
    %c0 = arith.constant 0 : index
    %c0_1 = arith.constant 0 : index
    %3 = vector.load %arg1[%c0, %c0_1] : memref<48x128xf32, #tpu.memory_space<vmem>>, vector<48x128xf32>
    %c0_2 = arith.constant 0 : index
    %c0_3 = arith.constant 0 : index
    %4 = vector.load %arg2[%c0_2, %c0_3] : memref<48x128xf32, #tpu.memory_space<vmem>>, vector<48x128xf32>
    %5 = arith.subf %3, %4 : vector<48x128xf32>
    %c48_i32 = arith.constant 48 : i32
    %6 = arith.muli %arg0, %c48_i32 : i32
    %7 = tpu.iota {dimensions = array<i32: 0>} : vector<48x128xi32>
    %8 = vector.broadcast %6 : i32 to vector<48x128xi32>
    %9 = arith.addi %8, %7 : vector<48x128xi32>
    %c128_i32 = arith.constant 128 : i32
    %10 = vector.broadcast %c128_i32 : i32 to vector<48x128xi32>
    %11 = arith.muli %9, %10 : vector<48x128xi32>
    %12 = tpu.iota {dimensions = array<i32: 1>} : vector<48x128xi32>
    %13 = arith.addi %11, %12 : vector<48x128xi32>
    %c6144_i32 = arith.constant 6144 : i32
    %14 = vector.broadcast %c6144_i32 : i32 to vector<48x128xi32>
    %15 = arith.cmpi slt, %13, %14 : vector<48x128xi32>
    %c0_4 = arith.constant 0 : index
    %16 = memref.load %arg4[%c0_4] : memref<1xf32, #tpu.memory_space<smem>>
    %17 = arith.mulf %5, %5 : vector<48x128xf32>
    %cst = arith.constant 0.000000e+00 : f32
    %18 = vector.broadcast %cst : f32 to vector<48x128xf32>
    %19 = arith.select %15, %17, %18 : vector<48x128xi1>, vector<48x128xf32>
    %20 = vector.shape_cast %19 : vector<48x128xf32> to vector<1x48x128xf32>
    %cst_5 = arith.constant dense<0.000000e+00> : vector<1xf32>
    %21 = vector.multi_reduction <add>, %20, %cst_5 [1, 2] : vector<1x48x128xf32> to vector<1xf32>
    %22 = vector.shape_cast %21 : vector<1xf32> to vector<1x1x1xf32>
    %23 = vector.extract %22[0, 0, 0] : f32 from vector<1x1x1xf32>
    %24 = arith.addf %16, %23 : f32
    %c0_6 = arith.constant 0 : index
    %25 = memref.load %arg4[%c0_6] : memref<1xf32, #tpu.memory_space<smem>>
    memref.store %24, %arg4[%c0_6] : memref<1xf32, #tpu.memory_space<smem>>
    %c0_7 = arith.constant 0 : index
    %26 = memref.load %arg4[%c0_7] : memref<1xf32, #tpu.memory_space<smem>>
    %cst_8 = arith.constant 1.62760422E-4 : f32
    %27 = arith.mulf %26, %cst_8 : f32
    %c0_9 = arith.constant 0 : index
    %c0_10 = arith.constant 0 : index
    %28 = memref.load %arg3[%c0_9, %c0_10] : memref<1x1xf32, #tpu.memory_space<smem>>
    memref.store %27, %arg3[%c0_9, %c0_10] : memref<1x1xf32, #tpu.memory_space<smem>>
    return
  }
  func.func @transform_0(%arg0: i32) -> (i32, i32) {
    %c0_i32 = arith.constant 0 : i32
    %c0_i32_0 = arith.constant 0 : i32
    return %arg0, %c0_i32 : i32, i32
  }
  func.func @transform_1(%arg0: i32) -> (i32, i32) {
    %c0_i32 = arith.constant 0 : i32
    %c0_i32_0 = arith.constant 0 : i32
    return %arg0, %c0_i32 : i32, i32
  }
  func.func @transform_2(%arg0: i32) -> (i32, i32) {
    %c0_i32 = arith.constant 0 : i32
    %c0_i32_0 = arith.constant 0 : i32
    %c0_i32_1 = arith.constant 0 : i32
    return %c0_i32, %c0_i32_0 : i32, i32
  }
}

</mosaic_0001>

<bundles_post_ra>
// kernel: tpu_custom_call.1
= control target key start
LH: loop header
LB: loop body
LE: loop exit
PB: predicated region body
PF: predicated region fallthrough
CT: control target
= control target key end

     0   :  { %7 = vsyncpa [#allocation4], 0  ;;  %s238_s0 = inlined_call_operand.hbm [shape: f32[48,128], index: 0, kind: input, shape index: {}]   ;;  %s239_s1 = inlined_call_operand.hbm [shape: f32[48,128], index: 1, kind: input, shape index: {}]   ;;  %s240_s2 = inlined_call_operand.hbm [shape: f32[1,1], index: 2, kind: output, shape index: {}]  }
   0x1   :  { %8 = vsyncpa [#allocation7], 0 }
   0x2   :  { %9 = vsyncpa [#allocation5], 0  ;;  %s209_s9 = smov [#allocation3]  }
   0x3   :  { %s15_s10 = sshll.u32 %s209_s9, 4  ;;  %s16_s10 = int_to_ptr.vmem [resolvable:$true] %s15_s10 }
   0x4   :  { %s163_s11 = scalar_lea.vmem %s16_s10, 768  ;;  %p168_p1 = scmp.lt.s32.totalorder %s16_s10, %s16_s10 }
   0x5   :  { %p164_p0 = scmp.ne.s32.totalorder %s16_s10, %s163_s11  ;;  %p169_p2 = scmp.lt.s32.totalorder %s163_s11, %s163_s11 }
   0x7   :  { %p170_p3 = por %p169_p2, %p168_p1 }
   0x9   :  { %p171_p4 = pnand %p170_p3, %p164_p0 }
   0xb   :  { %174 = shalt.err (!%p171_p4)
}
   0xc   :  { %s210_s12 = smov 128   ;;  %s211_s13 = smov 8  }
   0xd   :  { %21 = dma.hbm_to_vmem [thread:$0]  %s238_s0, 768, %s16_s10, [#allocation4], %s210_s12, %s210_s12, %s211_s13  }
   0xe   :  { %s212_s16 = smov [#allocation6]  }
   0xf   :  { %s27_s17 = sshll.u32 %s212_s16, 4  ;;  %s28_s17 = int_to_ptr.vmem [resolvable:$true] %s27_s17 }
  0x10   :  { %s183_s18 = scalar_lea.vmem %s28_s17, 768  ;;  %p188_p6 = scmp.lt.s32.totalorder %s28_s17, %s28_s17 }
  0x11   :  { %p184_p5 = scmp.ne.s32.totalorder %s28_s17, %s183_s18  ;;  %p189_p7 = scmp.lt.s32.totalorder %s183_s18, %s183_s18 }
  0x13   :  { %p190_p8 = por %p189_p7, %p188_p6 }
  0x15   :  { %p191_p9 = pnand %p190_p8, %p184_p5 }
  0x17   :  { %194 = shalt.err (!%p191_p9)
}
  0x18   :  { %33 = dma.hbm_to_vmem [thread:$0]  %s239_s1, 768, %s28_s17, [#allocation7], %s210_s12, %s210_s12, %s211_s13  }
  0x19   :  { %203 = dma.done.wait [#allocation4], 768  }
  0x1a   :  { %204 = vsyncadd [#allocation4], 4294966528 }
  0x1b   :  { %205 = dma.done.wait [#allocation7], 768  }
  0x1c   :  { %206 = vsyncadd [#allocation7], 4294966528  ;;  %v65_v0 = vlaneseq  ;;  %v46_v11 = vld [vmem:[#allocation3] sm:$0xff]  ;;  %v47_v12 = vld [vmem:[#allocation3 + $0x8] sm:$0xff]  ;;  %s213_s21 = smov [#allocation8]  }
  0x1d   :  { %v48_v13 = vld [vmem:[#allocation3 + $0x10] sm:$0xff]  ;;  %v49_v16 = vld [vmem:[#allocation3 + $0x18] sm:$0xff]  ;;  %v50_v17 = vld [vmem:[#allocation3 + $0x20] sm:$0xff] }
  0x1e   :  { %v66_v1 = vshrl.u32 %v65_v0, 7  ;;  %v86_v2 = vand.u32 127, %v65_v0  ;;  %v51_v18 = vld [vmem:[#allocation3 + $0x28] sm:$0xff]  ;;  %v52_v22 = vld [vmem:[#allocation6] sm:$0xff]  ;;  %v53_v23 = vld [vmem:[#allocation6 + $0x8] sm:$0xff] }
  0x1f   :  { %v54_v24 = vld [vmem:[#allocation6 + $0x10] sm:$0xff]  ;;  %v55_v26 = vld [vmem:[#allocation6 + $0x18] sm:$0xff]  ;;  %v56_v27 = vld [vmem:[#allocation6 + $0x20] sm:$0xff]  ;;  %v58_v29 = vsub.f32 %v46_v11, %v52_v22  ;;  %v59_v30 = vsub.f32 %v47_v12, %v53_v23 }
  0x20   :  { %v67_v3 = vadd.s32 8, %v66_v1  ;;  %v68_v4 = vadd.s32 16, %v66_v1  ;;  %v69_v5 = vadd.s32 24, %v66_v1  ;;  %v70_v6 = vadd.s32 32, %v66_v1  ;;  %v57_v28 = vld [vmem:[#allocation6 + $0x28] sm:$0xff] }
  0x21   :  { %v71_v7 = vadd.s32 40, %v66_v1  ;;  %v79_v8 = vmul.u32 128, %v66_v1  ;;  %v60_v31 = vsub.f32 %v48_v13, %v54_v24  ;;  %v61_v33 = vsub.f32 %v49_v16, %v55_v26 }
  0x22   :  { %v80_v9 = vmul.u32 128, %v67_v3  ;;  %v81_v10 = vmul.u32 128, %v68_v4  ;;  %v62_v34 = vsub.f32 %v50_v17, %v56_v27  ;;  %v63_v36 = vsub.f32 %v51_v18, %v57_v28 }
  0x23   :  { %v82_v14 = vmul.u32 128, %v69_v5  ;;  %v83_v15 = vmul.u32 128, %v70_v6  ;;  %v87_v19 = vadd.s32 %v86_v2, %v79_v8  ;;  %v100_v37 = vmul.f32 %v58_v29, %v58_v29 }
  0x24   :  { %v88_v20 = vadd.s32 %v86_v2, %v80_v9  ;;  %v89_v21 = vadd.s32 %v86_v2, %v81_v10  ;;  %v84_v25 = vmul.u32 128, %v71_v7  ;;  %v101_v38 = vmul.f32 %v59_v30, %v59_v30 }
  0x25   :  { %v90_v32 = vadd.s32 %v86_v2, %v82_v14  ;;  %v91_v35 = vadd.s32 %v86_v2, %v83_v15  ;;  %vm93_vm0 = vcmp.lt.s32.totalorder %v87_v19, 6144  ;;  %v102_v39 = vmul.f32 %v60_v31, %v60_v31 }
  0x26   :  { %vm94_vm1 = vcmp.lt.s32.totalorder %v88_v20, 6144  ;;  %vm95_vm2 = vcmp.lt.s32.totalorder %v89_v21, 6144  ;;  %v103_v40 = vmul.f32 %v61_v33, %v61_v33  ;;  %v92_v41 = vadd.s32 %v86_v2, %v84_v25 }
  0x27   :  { %vm96_vm3 = vcmp.lt.s32.totalorder %v90_v32, 6144  ;;  %v104_v42 = vmul.f32 %v62_v34, %v62_v34  ;;  %v106_v43 = vsel %vm93_vm0, %v100_v37, 0.0  ;;  %v107_v44 = vsel %vm94_vm1, %v101_v38, 0.0 }
  0x28   :  { %v108_v45 = vsel %vm95_vm2, %v102_v39, 0.0  ;;  %vm97_vm4 = vcmp.lt.s32.totalorder %v91_v35, 6144  ;;  %v112_v46 = vadd.f32 %v107_v44, %v106_v43  ;;  %v105_v47 = vmul.f32 %v63_v36, %v63_v36 }
  0x29   :  { %v109_v48 = vsel %vm96_vm3, %v103_v40, 0.0  ;;  %vm98_vm5 = vcmp.lt.s32.totalorder %v92_v41, 6144  ;;  %v110_v50 = vsel %vm97_vm4, %v104_v42, 0.0 }
  0x2a   :  { %v113_v49 = vadd.f32 %v112_v46, %v108_v45  ;;  %v111_v52 = vsel %vm98_vm5, %v105_v47, 0.0 }
  0x2c   :  { %v114_v51 = vadd.f32 %v113_v49, %v109_v48 }
  0x2e   :  { %v115_v53 = vadd.f32 %v114_v51, %v110_v50 }
  0x30   :  { %v116_v54 = vadd.f32 %v115_v53, %v111_v52 }
  0x32   :  { %117 = vadd.xlane.f32.xlu0 %v116_v54 }
  0xbb   :  { %v118_v55 = vpop.xlane.xlu0 %117 }
  0xbc   :  { %v119_v56 = vrot.slane %v118_v55, 4 }
  0xbe   :  { %v120_v57 = vadd.f32 %v119_v56, %v118_v55 }
  0xc0   :  { %v121_v58 = vrot.slane %v120_v57, 2 }
  0xc2   :  { %v122_v59 = vadd.f32 %v121_v58, %v120_v57 }
  0xc4   :  { %v123_v60 = vrot.slane %v122_v59, 1 }
  0xc6   :  { %v124_v61 = vadd.f32 %v123_v60, %v122_v59 }
  0xc8   :  { %148 = vpush %v124_v61 }
  0xf9   :  { %s149_s0 = spop %148 }
  0xfa   :  { %s130_s1 = smul.f32 0.00016276042, %s149_s0 }
  0xfc   :  { %132 = sst [smem:[#allocation8]] %s130_s1 }
  0xfd   :  { %140 = dma.smem_to_hbm %s213_s21, 16, %s240_s2, [#allocation5]  }
  0xfe   :  { %207 = dma.done.wait [#allocation5], 16  }
  0xff   :  { %208 = vsyncadd [#allocation5], 4294967280 }
 0x100   :  { %144 = sfence }
 0x101   :  { %145 = vsyncpa [#allocation4], 1 }
 0x102   :  { %146 = vsyncpa [#allocation7], 1 }
 0x103   :  { %147 = vsyncpa [#allocation5], 1 }

</bundles_post_ra>
